<compile_context>
chip_gen: v6e
topology: v6e:2x2x1
jax: 0.10.0
libtpu: 0.0.40
codegen_flags: <defaults>
</compile_context>

<pallas_src>
import math
import functools

import jax
import jax.numpy as jnp
from jax import lax
from jax.experimental import pallas as pl
from jax.experimental.pallas import tpu as pltpu


def _round_up(x, m):
    return ((x + m - 1) // m) * m


def _vmem_capacity_bytes():
    try:
        return int(pltpu.get_tpu_info().vmem_capacity_bytes)
    except Exception:
        return 64 << 20  # conservative fallback (v7x per-TensorCore)


# -----------------------------------------------------------------------------
# Kernel
# -----------------------------------------------------------------------------
def ffn_kernel(x_ref, w1t_ref, b1_ref, w2t_ref, b2_ref, o_ref, acc_ref):
    # x_ref:   (tm, d_model)      current tile of tokens
    # w1t_ref: (d_model, tff)     W1^T slab (natural (k, n) layout, no XLU xpose)
    # b1_ref:  (1, tff)
    # w2t_ref: (tff, d_model)     W2^T slab
    # b2_ref:  (1, d_model)
    # o_ref:   (tm, d_model)
    # acc_ref: (tm, d_model) f32  accumulator, resident across the dff axis
    j = pl.program_id(1)

    # h = relu(x @ W1T + b1)  -> (tm, tff), f32 out of the MXU.
    h = jnp.dot(x_ref[...], w1t_ref[...], preferred_element_type=jnp.float32)
    h = jnp.maximum(h + b1_ref[...].astype(jnp.float32), 0.0)

    # Partial y contribution of this dff slab -> (tm, d_model), f32 accumulate.
    partial = jnp.dot(h.astype(w2t_ref.dtype), w2t_ref[...],
                      preferred_element_type=jnp.float32)

    @pl.when(j == 0)
    def _():
        acc_ref[...] = partial          # first step: direct write, no init/RMW

    @pl.when(j > 0)
    def _():
        acc_ref[...] += partial

    @pl.when(j == pl.num_programs(1) - 1)
    def _():
        # b2 folded into the epilogue; dropout is identity in eval mode.
        o_ref[...] = (acc_ref[...] +
                      b2_ref[...].astype(jnp.float32)).astype(o_ref.dtype)


# -----------------------------------------------------------------------------
# Tile / VMEM selection (generation aware)
# -----------------------------------------------------------------------------
def select_tiles(n_tokens, d_model, dff, dtype, tm=None, tff=None):
    vmem_cap = _vmem_capacity_bytes()
    if tm is None or tff is None:
        if vmem_cap >= (100 << 20):          # v5e / v6e: 128 MiB physical VMEM
            tm_d, tff_d = 512, 1024
        else:                                # v7x: 64 MiB per TensorCore
            tm_d, tff_d = 512, 512
        tm = tm_d if tm is None else tm
        tff = tff_d if tff is None else tff

    # Token tiling: never exceed the (sublane-rounded) token count, and keep
    # >= 2 token tiles when tokens allow so megacore / the second TC has work.
    n8 = _round_up(max(n_tokens, 1), 8)
    tm = min(tm, n8)
    if pl.cdiv(n8, tm) < 2 and tm >= 256:
        tm = _round_up(tm // 2, 8)

    # Hidden tiling: cap by dff (padding to a tff multiple happens once in
    # prepare_params, never in the per-call path).
    tff = min(tff, dff)

    # Fit the double-buffered working set in VMEM, leaving headroom for
    # compiler-internal scratch / semaphores.
    dbytes = jnp.dtype(dtype).itemsize
    cap = (vmem_cap * 7) // 8

    def est(tm_, tff_):
        return (2 * tm_ * d_model * dbytes        # x tiles
                + 2 * d_model * tff_ * dbytes     # W1^T slabs
                + 2 * tff_ * dbytes               # b1 slabs
                + 2 * tff_ * d_model * dbytes     # W2^T slabs
                + 2 * d_model * dbytes            # b2
                + 2 * tm_ * d_model * dbytes      # out tiles
                + tm_ * d_model * 4               # f32 accumulator
                + tm_ * tff_ * 4)                 # h intermediate

    margin = 4 << 20
    while est(tm, tff) + margin > cap and tff > 128:
        tff = max(tff // 2, 128)
    while est(tm, tff) + margin > cap and tm > 128:
        tm = _round_up(max(tm // 2, 128), 8)

    vmem_limit = int(min(max(est(tm, tff) + margin, 32 << 20), cap))
    return tm, tff, vmem_limit


# -----------------------------------------------------------------------------
# One-time parameter prep (do NOT put in the per-call path; cache the result)
# -----------------------------------------------------------------------------
def prepare_params(w1, b1, w2, b2, tff):
    """w1: (dff, d_model), b1: (dff,), w2: (d_model, dff), b2: (d_model,)
    (PyTorch nn.Linear conventions).  Transposes once to the natural (k, n)
    MXU layout and pads dff to a multiple of tff."""
    dff, d_model = w1.shape
    dff_pad = _round_up(dff, tff)
    w1t = w1.T                      # (d_model, dff)
    w2t = w2.T                      # (dff, d_model)
    if dff_pad != dff:
        # Zero-padded W1^T columns / b1 entries give h == 0, which multiplies
        # zero-padded W2^T rows -> no effect on the result.
        w1t = jnp.pad(w1t, ((0, 0), (0, dff_pad - dff)))
        b1 = jnp.pad(b1, (0, dff_pad - dff))
        w2t = jnp.pad(w2t, ((0, dff_pad - dff), (0, 0)))
    return w1t, b1.reshape(1, dff_pad), w2t, b2.reshape(1, d_model)


# -----------------------------------------------------------------------------
# Forward
# -----------------------------------------------------------------------------
@functools.partial(jax.jit, static_argnames=("tm", "tff", "vmem_limit"))
def ffn_forward(x, w1t, b1r, w2t, b2r, *, tm, tff, vmem_limit):
    B, S, d_model = x.shape
    dff_pad = w1t.shape[1]
    N = B * S
    dtype = x.dtype

    x2 = x.reshape(N, d_model)
    n_pad = _round_up(N, tm)
    if n_pad != N:
        x2 = jnp.pad(x2, ((0, n_pad - N), (0, 0)))

    nj = dff_pad // tff
    grid = (n_pad // tm, nj)

    # Serpentine walk of the dff axis: forward on even token tiles, backward
    # on odd ones, so the last weight slab is reused across the i boundary.
    if nj > 1:
        def serp(i, j):
            return jnp.where(i % 2 == 0, j, nj - 1 - j)
    else:
        def serp(i, j):
            return j

    out = pl.pallas_call(
        ffn_kernel,
        out_shape=jax.ShapeDtypeStruct((n_pad, d_model), dtype),
        grid_spec=pltpu.PrefetchScalarGridSpec(
            num_scalar_prefetch=0,
            grid=grid,
            in_specs=[
                pl.BlockSpec((tm, d_model), lambda i, j: (i, 0)),            # x
                # TODO(synk): on v6e (spare VMEM), pipeline_mode=pl.Buffered(3)
                # on the two weight slabs hides residual DMA jitter; not
                # applied by default because it overcommits v7x's 64 MiB.
                pl.BlockSpec((d_model, tff), lambda i, j: (0, serp(i, j))),  # W1^T
                pl.BlockSpec((1, tff), lambda i, j: (0, serp(i, j))),        # b1
                pl.BlockSpec((tff, d_model), lambda i, j: (serp(i, j), 0)),  # W2^T
                pl.BlockSpec((1, d_model), lambda i, j: (0, 0)),             # b2
            ],
            out_specs=pl.BlockSpec((tm, d_model), lambda i, j: (i, 0)),
            scratch_shapes=[pltpu.VMEM((tm, d_model), jnp.float32)],
        ),
        compiler_params=pltpu.CompilerParams(
            # token axis parallel (megacore / v7x 2-TC sharding),
            # dff reduction axis arbitrary and innermost.
            dimension_semantics=("parallel", "arbitrary"),
            vmem_limit_bytes=vmem_limit,
        ),
    )(x2, w1t, b1r, w2t, b2r)

    return out[:N].reshape(B, S, d_model)


def positionwise_feed_forward(x, w1, b1, w2, b2, *, tm=None, tff=None):
    """Convenience one-shot API taking PyTorch-layout params.  For repeated
    calls, run select_tiles + prepare_params once and reuse the result."""
    B, S, d_model = x.shape
    dff = w1.shape[0]
    tm, tff, vmem_limit = select_tiles(B * S, d_model, dff, x.dtype, tm, tff)
    params = prepare_params(w1, b1, w2, b2, tff)
    return ffn_forward(x, *params, tm=tm, tff=tff, vmem_limit=vmem_limit)


def init_params(key, d_model, dff, dtype=jnp.float32):
    """Deterministic init mimicking nn.Linear's U(-1/sqrt(fan_in), 1/sqrt(fan_in))."""
    k1, k2, k3, k4 = jax.random.split(key, 4)
    bound1 = 1.0 / math.sqrt(d_model)
    bound2 = 1.0 / math.sqrt(dff)
    w1 = jax.random.uniform(k1, (dff, d_model), dtype, -bound1, bound1)
    b1 = jax.random.uniform(k2, (dff,), dtype, -bound1, bound1)
    w2 = jax.random.uniform(k3, (d_model, dff), dtype, -bound2, bound2)
    b2 = jax.random.uniform(k4, (d_model,), dtype, -bound2, bound2)
    return w1, b1, w2, b2


if __name__ == "__main__":
    key = jax.random.PRNGKey(0)
    batch, seq, d_model, dff = 2, 8, 32, 64

    kx, kp = jax.random.split(key)
    x = jax.random.normal(kx, (batch, seq, d_model), jnp.float32)
    w1, b1, w2, b2 = init_params(kp, d_model, dff)

    # Recommended path: select tiles + prepare weights once, then call.
    tm, tff, vmem_limit = select_tiles(batch * seq, d_model, dff, x.dtype)
    params = prepare_params(w1, b1, w2, b2, tff)
    y = ffn_forward(x, *params, tm=tm, tff=tff, vmem_limit=vmem_limit)
    y = jax.block_until_ready(y)

    # Pure-JAX reference (eval mode: dropout is identity).
    ref = jnp.maximum(x @ w1.T + b1, 0.0) @ w2.T + b2
    assert y.shape == (batch, seq, d_model)
    assert jnp.allclose(y, ref, atol=1e-5, rtol=1e-5)

    print("KERNEL_OK")
</pallas_src>

<mosaic_0001>
module attributes {stable_mosaic.version = 11 : i64} {
  func.func @ffn_kernel(%arg0: i32, %arg1: i32, %arg2: memref<16x32xf32, #tpu.memory_space<vmem>>, %arg3: memref<32x64xf32, #tpu.memory_space<vmem>>, %arg4: memref<1x64xf32, #tpu.memory_space<vmem>>, %arg5: memref<64x32xf32, #tpu.memory_space<vmem>>, %arg6: memref<1x32xf32, #tpu.memory_space<vmem>>, %arg7: memref<16x32xf32, #tpu.memory_space<vmem>>, %arg8: memref<16x32xf32, #tpu.memory_space<vmem>>) attributes {dimension_semantics = [#tpu.dimension_semantics<parallel>, #tpu.dimension_semantics<arbitrary>], iteration_bounds = array<i64: 1, 1>, scalar_prefetch = 0 : i64, scratch_operands = 1 : i64, tpu.core_type = #tpu.core_type<tc>, window_params = [{transform_indices = @transform_0, window_bounds = array<i64: 16, 32>}, {transform_indices = @transform_1, window_bounds = array<i64: 32, 64>}, {transform_indices = @transform_2, window_bounds = array<i64: 1, 64>}, {transform_indices = @transform_3, window_bounds = array<i64: 64, 32>}, {pipeline_mode = #tpu.pipeline_mode<synchronous>, transform_indices = @transform_4, window_bounds = array<i64: 1, 32>}, {transform_indices = @transform_5, window_bounds = array<i64: 16, 32>}]} {
    %c0 = arith.constant 0 : index
    %c0_0 = arith.constant 0 : index
    %0 = vector.load %arg2[%c0, %c0_0] : memref<16x32xf32, #tpu.memory_space<vmem>>, vector<16x32xf32>
    %c0_1 = arith.constant 0 : index
    %c0_2 = arith.constant 0 : index
    %1 = vector.load %arg3[%c0_1, %c0_2] : memref<32x64xf32, #tpu.memory_space<vmem>>, vector<32x64xf32>
    %cst = arith.constant dense<0.000000e+00> : vector<16x64xf32>
    %2 = tpu.matmul %0, %1, %cst {dimension_numbers = #tpu.dot_dimension_numbers<[1], [0], [0], [1], [0, 0, 1, 1], [], []>} : vector<16x32xf32>, vector<32x64xf32>, vector<16x64xf32> -> vector<16x64xf32>
    %c0_3 = arith.constant 0 : index
    %c0_4 = arith.constant 0 : index
    %3 = vector.load %arg4[%c0_3, %c0_4] : memref<1x64xf32, #tpu.memory_space<vmem>>, vector<1x64xf32>
    %4 = vector.broadcast %3 : vector<1x64xf32> to vector<16x64xf32>
    %5 = arith.addf %2, %4 : vector<16x64xf32>
    %cst_5 = arith.constant 0.000000e+00 : f32
    %6 = vector.broadcast %cst_5 : f32 to vector<16x64xf32>
    %7 = arith.maximumf %5, %6 : vector<16x64xf32>
    %c0_6 = arith.constant 0 : index
    %c0_7 = arith.constant 0 : index
    %8 = vector.load %arg5[%c0_6, %c0_7] : memref<64x32xf32, #tpu.memory_space<vmem>>, vector<64x32xf32>
    %cst_8 = arith.constant dense<0.000000e+00> : vector<16x32xf32>
    %9 = tpu.matmul %7, %8, %cst_8 {dimension_numbers = #tpu.dot_dimension_numbers<[1], [0], [0], [1], [0, 0, 1, 1], [], []>} : vector<16x64xf32>, vector<64x32xf32>, vector<16x32xf32> -> vector<16x32xf32>
    %c0_i32 = arith.constant 0 : i32
    %10 = arith.cmpi eq, %arg1, %c0_i32 : i32
    %11 = arith.extui %10 : i1 to i32
    %c0_i32_9 = arith.constant 0 : i32
    %12 = arith.cmpi ne, %11, %c0_i32_9 : i32
    scf.if %12 {
      %c0_14 = arith.constant 0 : index
      %c0_15 = arith.constant 0 : index
      %19 = vector.load %arg8[%c0_14, %c0_15] : memref<16x32xf32, #tpu.memory_space<vmem>>, vector<16x32xf32>
      tpu.vector_store %arg8[%c0_14, %c0_15], %9 {strides = array<i32>} : memref<16x32xf32, #tpu.memory_space<vmem>>, vector<16x32xf32>,
    } else {
    }
    %c0_i32_10 = arith.constant 0 : i32
    %13 = arith.cmpi sgt, %arg1, %c0_i32_10 : i32
    %14 = arith.extui %13 : i1 to i32
    %c0_i32_11 = arith.constant 0 : i32
    %15 = arith.cmpi ne, %14, %c0_i32_11 : i32
    scf.if %15 {
      %c0_14 = arith.constant 0 : index
      %c0_15 = arith.constant 0 : index
      %19 = vector.load %arg8[%c0_14, %c0_15] : memref<16x32xf32, #tpu.memory_space<vmem>>, vector<16x32xf32>
      %20 = arith.addf %19, %9 : vector<16x32xf32>
      %c0_16 = arith.constant 0 : index
      %c0_17 = arith.constant 0 : index
      %21 = vector.load %arg8[%c0_16, %c0_17] : memref<16x32xf32, #tpu.memory_space<vmem>>, vector<16x32xf32>
      tpu.vector_store %arg8[%c0_16, %c0_17], %20 {strides = array<i32>} : memref<16x32xf32, #tpu.memory_space<vmem>>, vector<16x32xf32>,
    } else {
    }
    %c0_i32_12 = arith.constant 0 : i32
    %16 = arith.cmpi eq, %arg1, %c0_i32_12 : i32
    %17 = arith.extui %16 : i1 to i32
    %c0_i32_13 = arith.constant 0 : i32
    %18 = arith.cmpi ne, %17, %c0_i32_13 : i32
    scf.if %18 {
      %c0_14 = arith.constant 0 : index
      %c0_15 = arith.constant 0 : index
      %19 = vector.load %arg8[%c0_14, %c0_15] : memref<16x32xf32, #tpu.memory_space<vmem>>, vector<16x32xf32>
      %c0_16 = arith.constant 0 : index
      %c0_17 = arith.constant 0 : index
      %20 = vector.load %arg6[%c0_16, %c0_17] : memref<1x32xf32, #tpu.memory_space<vmem>>, vector<1x32xf32>
      %21 = vector.broadcast %20 : vector<1x32xf32> to vector<16x32xf32>
      %22 = arith.addf %19, %21 : vector<16x32xf32>
      %c0_18 = arith.constant 0 : index
      %c0_19 = arith.constant 0 : index
      %23 = vector.load %arg7[%c0_18, %c0_19] : memref<16x32xf32, #tpu.memory_space<vmem>>, vector<16x32xf32>
      tpu.vector_store %arg7[%c0_18, %c0_19], %22 {strides = array<i32>} : memref<16x32xf32, #tpu.memory_space<vmem>>, vector<16x32xf32>,
    } else {
    }
    return
  }
  func.func @transform_0(%arg0: i32, %arg1: i32) -> (i32, i32) {
    %c0_i32 = arith.constant 0 : i32
    %c0_i32_0 = arith.constant 0 : i32
    return %arg0, %c0_i32 : i32, i32
  }
  func.func @transform_1(%arg0: i32, %arg1: i32) -> (i32, i32) {
    %c0_i32 = arith.constant 0 : i32
    %c0_i32_0 = arith.constant 0 : i32
    return %c0_i32, %arg1 : i32, i32
  }
  func.func @transform_2(%arg0: i32, %arg1: i32) -> (i32, i32) {
    %c0_i32 = arith.constant 0 : i32
    %c0_i32_0 = arith.constant 0 : i32
    return %c0_i32, %arg1 : i32, i32
  }
  func.func @transform_3(%arg0: i32, %arg1: i32) -> (i32, i32) {
    %c0_i32 = arith.constant 0 : i32
    %c0_i32_0 = arith.constant 0 : i32
    return %arg1, %c0_i32 : i32, i32
  }
  func.func @transform_4(%arg0: i32, %arg1: i32) -> (i32, i32) {
    %c0_i32 = arith.constant 0 : i32
    %c0_i32_0 = arith.constant 0 : i32
    %c0_i32_1 = arith.constant 0 : i32
    return %c0_i32, %c0_i32_0 : i32, i32
  }
  func.func @transform_5(%arg0: i32, %arg1: i32) -> (i32, i32) {
    %c0_i32 = arith.constant 0 : i32
    %c0_i32_0 = arith.constant 0 : i32
    return %arg0, %c0_i32 : i32, i32
  }
}

</mosaic_0001>

<bundles_post_ra>
// kernel: ffn_forward.1
= control target key start
LH: loop header
LB: loop body
LE: loop exit
PB: predicated region body
PF: predicated region fallthrough
CT: control target
= control target key end

     0   :  { %vm34_vm0 = vcmask 261120   ;;  %s423_s0 = inlined_call_operand.vmem [shape: f32[16,32], index: 0, kind: input, shape index: {}]   ;;  %s424_s1 = inlined_call_operand.vmem [shape: f32[32,64], index: 1, kind: input, shape index: {}]   ;;  %s425_s2 = inlined_call_operand.vmem [shape: f32[1,64], index: 2, kind: input, shape index: {}]   ;;  %s426_s3 = inlined_call_operand.vmem [shape: f32[64,32], index: 3, kind: input, shape index: {}]   ;;  %s427_s4 = inlined_call_operand.vmem [shape: f32[1,32], index: 4, kind: input, shape index: {}]   ;;  %s428_s5 = inlined_call_operand.hbm [shape: f32[16,32], index: 5, kind: output, shape index: {}]  }
   0x1   :  { %v26_v0 = vld [vmem:[%s424_s1 + $0x18] sm:$0xff]  ;;  %v25_v1 = vld [vmem:[%s424_s1 + $0x10] sm:$0xff]  ;;  %v21_v2 = vld [vmem:[%s423_s0] sm:$0xff] }
   0x2   :  { %278 = vmatprep.subr.mxu0 %v26_v0  ;;  %v24_v3 = vld [vmem:[%s424_s1 + $0x8] sm:$0xff]  ;;  %286 = vmatprep.mubr.msk.f32.mxu0 %vm34_vm0, %v21_v2  ;;  %v125_v4 = vld [vmem:[%s426_s3 + $0x38] sm:$0xff]  ;;  %v124_v5 = vld [vmem:[%s426_s3 + $0x30] sm:$0xff] }
   0x3   :  { %279 = vmatpush3.msra.mxu0 %v26_v0  ;;  %289 = vmatprep.subr.mxu1 %v125_v4 }
   0x4   :  { %280 = vmatprep.subr.mxu0 %v25_v1 }
   0x5   :  { %10 = vsyncpa [#allocation4], 0  ;;  %281 = vmatpush3.msra.mxu0 %v25_v1  ;;  %v23_v6 = vld [vmem:[%s424_s1] sm:$0xff]  ;;  %290 = vmatpush3.msra.mxu1 %v125_v4  ;;  %v123_v7 = vld [vmem:[%s426_s3 + $0x28] sm:$0xff]  ;;  %vm126_vm1 = vcmask 523264  }
   0x6   :  { %282 = vmatprep.subr.mxu0 %v24_v3  ;;  %291 = vmatprep.subr.mxu1 %v124_v5  ;;  %v22_v8 = vld [vmem:[%s423_s0 + $0x8] sm:$0xff]  ;;  %v122_v9 = vld [vmem:[%s426_s3 + $0x20] sm:$0xff]  ;;  %v121_v10 = vld [vmem:[%s426_s3 + $0x18] sm:$0xff] }
   0x7   :  { %283 = vmatpush3.msra.mxu0 %v24_v3  ;;  %292 = vmatpush3.msra.mxu1 %v124_v5  ;;  %v120_v11 = vld [vmem:[%s426_s3 + $0x10] sm:$0xff]  ;;  %v119_v12 = vld [vmem:[%s426_s3 + $0x8] sm:$0xff]  ;;  %v118_v13 = vld [vmem:[%s426_s3] sm:$0xff] }
   0x8   :  { %284 = vmatprep.subr.mxu0 %v23_v6  ;;  %293 = vmatprep.subr.mxu1 %v123_v7  ;;  %v256_v14 = vld [vmem:[%s425_s2] ss:$0 sm:$0xff]  ;;  %s333_s2 = smov [#allocation3]  }
   0x9   :  { %285 = vmatpush3.msra.mxu0 %v23_v6  ;;  %294 = vmatpush3.msra.mxu1 %v123_v7  ;;  %v261_v23 = vld [vmem:[%s427_s4] ss:$0 sm:$0xff]  ;;  %s245_s22 = sshll.u32 %s333_s2, 4  ;;  %s246_s22 = int_to_ptr.vmem [resolvable:$true] %s245_s22 }
   0xa   :  { %287 = vmatmul.mubr.msk.f32.vlgmr.msra.gmra.mxu0 %vm34_vm0, %v22_v8  ;;  %295 = vmatprep.subr.mxu1 %v122_v9  ;;  %s311_s23 = scalar_lea.vmem %s246_s22, 256  ;;  %p316_p1 = scmp.lt.s32.totalorder %s246_s22, %s246_s22 }
   0xb   :  { %296 = vmatpush3.msra.mxu1 %v122_v9  ;;  %p312_p0 = scmp.ne.s32.totalorder %s246_s22, %s311_s23  ;;  %p317_p2 = scmp.lt.s32.totalorder %s311_s23, %s311_s23 }
   0xc   :  { %297 = vmatprep.subr.mxu1 %v121_v10 }
   0xd   :  { %298 = vmatpush3.msra.mxu1 %v121_v10  ;;  %p318_p3 = por %p317_p2, %p316_p1 }
   0xe   :  { %299 = vmatprep.subr.mxu1 %v120_v11 }
   0xf   :  { %300 = vmatpush3.msra.mxu1 %v120_v11  ;;  %p319_p4 = pnand %p318_p3, %p312_p0 }
  0x10   :  { %301 = vmatprep.subr.mxu1 %v119_v12 }
  0x11   :  { %302 = vmatpush3.msra.mxu1 %v119_v12 }
  0x12   :  { %303 = vmatprep.subr.mxu1 %v118_v13 }
  0x13   :  { %304 = vmatpush3.msra.mxu1 %v118_v13 }
  0xca   :  { %v288_v15 = vpop.f32.mrf.mxu0 }
  0xcb   :  { %v113_v16 = vadd.f32 %v288_v15, %v256_v14 }
  0xcc   :  { %v107_v17 = vpop.f32.mrf.mxu0 }
  0xcd   :  { %v108_v18 = vadd.f32 %v256_v14, %v107_v17  ;;  %v117_v20 = vmax.f32 %v113_v16, 0.0 }
  0xcf   :  { %v116_v19 = vmax.f32 %v108_v18, 0.0 }
  0xd1   :  { %305 = vmatprep.mubr.msk.f32.mxu1 %vm126_vm1, %v116_v19 }
  0xd2   :  { %306 = vmatmul.mubr.msk.f32.vlgmr.msra.gmra.mxu1 %vm126_vm1, %v117_v20 }
 0x192   :  { %v307_v21 = vpop.f32.mrf.mxu1 }
 0x193   :  { %213 = vst.msk [vmem:[#allocation2 + $0x8] sm:$0xff] %vm34_vm0, %v307_v21 }
 0x194   :  { %v199_v22 = vpop.f32.mrf.mxu1 }
 0x195   :  { %212 = vst.msk [vmem:[#allocation2] sm:$0xff] %vm34_vm0, %v199_v22 }
 0x19a   :  { %v228_v24 = vld [vmem:[#allocation2 + $0x8] sm:$0xff] }
 0x19b   :  { %v237_v25 = vadd.f32 %v261_v23, %v228_v24 }
 0x19c   :  { %v227_v26 = vld [vmem:[#allocation2] sm:$0xff] }
 0x19d   :  { %v236_v27 = vadd.f32 %v261_v23, %v227_v26  ;;  %239 = vst.msk [vmem:[#allocation3 + $0x8] sm:$0xff] %vm34_vm0, %v237_v25 }
 0x19f   :  { %238 = vst.msk [vmem:[#allocation3] sm:$0xff] %vm34_vm0, %v236_v27 }
 0x1a0   :  { %322 = shalt.err (!%p319_p4)
}
 0x1a1   :  { %s334_s24 = smov 128   ;;  %s335_s4 = smov 8  }
 0x1a2   :  { %251 = dma.vmem_to_hbm [thread:$0]  %s246_s22, 256, %s428_s5, [#allocation4], %s334_s24, %s334_s24, %s335_s4  }
 0x1a3   :  { %331 = dma.done.wait [#allocation4], 256  }
 0x1a4   :  { %332 = vsyncadd [#allocation4], 4294967040 }
 0x1a5   :  { %255 = vsyncpa [#allocation4], 1 }

</bundles_post_ra>
